<compile_context>
chip_gen: v7x
topology: tpu7x:2x2x1
jax: 0.10.0
libtpu: 0.0.40
codegen_flags: <defaults>
</compile_context>

<pallas_src>
import functools

import jax
import jax.numpy as jnp
from jax import lax
from jax.experimental import pallas as pl
from jax.experimental.pallas import tpu as pltpu


def _seq_loss_kernel(x_ref, y_ref, wm_ref, out_ref, *, sc, tile_l, jpc):
    """One (B, tile_l) lane-dense tile of the flattened (B, S*C) sequence loss.

    Grid = (P, jpc): axis 0 is a 'parallel' split of the column-tile range
    (both TensorCores on v7x), axis 1 walks that core's column tiles
    sequentially.  out_ref is the (1, B, tile_l) per-core elementwise
    accumulator: it stays resident in VMEM across axis 1 and is written back
    to HBM once per core.
    """
    p = pl.program_id(0)
    j = pl.program_id(1)

    @pl.when(j == 0)
    def _init():
        out_ref[...] = jnp.zeros_like(out_ref)

    x = x_ref[...].astype(jnp.float32)
    y = y_ref[...].astype(jnp.float32)
    # Numerically-stable BCE-with-logits (same formula torch uses):
    #   loss = max(x, 0) - x*y + log(1 + exp(-|x|))
    bce = jnp.maximum(x, 0.0) - x * y + jnp.log(1.0 + jnp.exp(-jnp.abs(x)))

    # Column validity: the last tile may overhang S*C (garbage VMEM, possibly
    # NaN/Inf) and whole tiles may lie past the end on the padded parallel
    # split.  Must be applied with jnp.where, NOT a multiply.
    b_rows = x_ref.shape[0]
    col0 = (p * jpc + j) * tile_l
    lane = lax.broadcasted_iota(jnp.int32, (b_rows, tile_l), 1)
    in_range = (col0 + lane) < sc

    # Elementwise weight: 0 on masked positions, 2 on class 0, 1 elsewhere.
    w = wm_ref[...].astype(jnp.float32)
    out_ref[...] += (jnp.where(in_range, bce, 0.0) * w)[None, :, :]


def ich_seq_cls_masked_loss(logits_seq, logits_cls, y_seq, y_cls, mask,
                            cls_weight=1.0, seq_weight=1.0,
                            max_tile_l=65536, num_parallel=2,
                            vmem_limit_bytes=40 * 1024 * 1024):
    """Pallas port of ICHSeqClsMaskedLoss.forward.

    logits_seq, y_seq : (B, S, C)   native dtype (f32 / bf16; targets may be
                                    bf16/int8 for less HBM traffic)
    logits_cls, y_cls : (B, C)
    mask              : (B, S) bool, True = position is masked out / padding
    """
    B, S, C = logits_seq.shape
    SC = S * C

    # ---- lane-dense flat views: pure reshapes, zero HBM relayout ----
    x = logits_seq.reshape(B, SC)
    y = y_seq.reshape(B, SC)

    # Class weights [2, 1, ..., 1] folded with the position mask into one
    # int8 elementwise weight (0 on masked positions).  Cheap: ~C*B*S bytes.
    class_w = jnp.array([2] + [1] * (C - 1), dtype=jnp.int8)
    wm = jnp.where(mask[:, :, None], jnp.int8(0),
                   class_w[None, None, :]).reshape(B, SC)

    # ---- tile size: biggest lane tile that fits the VMEM budget ----
    rows8 = max(8, -(-B // 8) * 8)           # f32 sublane padding of a block
    rows32 = max(32, -(-B // 32) * 32)       # int8 sublane padding
    per_col = rows8 * (4 * 2 * 2 + 4 * 2) + rows32 * 1 * 2   # x,y dbuf + out dbuf + wm dbuf
    budget = 24 * 1024 * 1024
    tile_cap = max(128, min(max_tile_l, (budget // per_col) // 128 * 128))
    tile_l = SC if SC <= tile_cap else tile_cap

    n_j = -(-SC // tile_l)                   # cdiv: number of column tiles
    P = max(1, num_parallel)                 # v7x: 2 TensorCores; harmless on 1-TC chips
    jpc = -(-n_j // P)                       # column tiles per core

    kernel = functools.partial(_seq_loss_kernel, sc=SC, tile_l=tile_l, jpc=jpc)

    def in_map(p, j):
        # Clamp padded grid steps to the last real tile; their contribution is
        # zeroed in-kernel by the column-validity predicate.
        return (0, jnp.minimum(p * jpc + j, n_j - 1))

    partials = pl.pallas_call(
        kernel,
        out_shape=jax.ShapeDtypeStruct((P, B, tile_l), jnp.float32),
        grid_spec=pltpu.PrefetchScalarGridSpec(
            num_scalar_prefetch=0,
            grid=(P, jpc),
            in_specs=[
                pl.BlockSpec((B, tile_l), in_map),       # logits (native dtype)
                pl.BlockSpec((B, tile_l), in_map),       # targets (native dtype)
                pl.BlockSpec((B, tile_l), in_map),       # int8 weight/mask
            ],
            out_specs=pl.BlockSpec((1, B, tile_l), lambda p, j: (p, 0, 0)),
        ),
        compiler_params=pltpu.CompilerParams(
            dimension_semantics=("parallel", "arbitrary"),
            vmem_limit_bytes=vmem_limit_bytes),
    )(x, y, wm)

    # ---- final scalar normalization (plain JAX, negligible) ----
    count = jnp.sum((~mask).astype(jnp.float32))
    seq_loss = jnp.sum(partials) * (1.0 / 7.0) / count   # NaN if all masked (matches torch)

    # ---- tiny (B, C) classification branch: plain JAX per perf review ----
    xc = logits_cls.astype(jnp.float32)
    yc = y_cls.astype(jnp.float32)
    lc = jnp.maximum(xc, 0.0) - xc * yc + jnp.log(1.0 + jnp.exp(-jnp.abs(xc)))
    cls_loss = jnp.mean((lc[:, 0] * 2.0 + jnp.sum(lc[:, 1:], axis=1)) / 7.0)

    return {"seq_loss": seq_loss,
            "cls_loss": cls_loss,
            "loss": cls_weight * cls_loss + seq_weight * seq_loss}


def _reference(logits_seq, logits_cls, y_seq, y_cls, mask,
               cls_weight=1.0, seq_weight=1.0):
    """Pure-JAX reference mirroring the PyTorch module exactly."""
    def bce(x, y):
        return jnp.maximum(x, 0.0) - x * y + jnp.log1p(jnp.exp(-jnp.abs(x)))

    seq = bce(logits_seq.astype(jnp.float32), y_seq.astype(jnp.float32))
    seq = seq.reshape(-1, seq.shape[-1])
    keep = (~mask).reshape(-1).astype(jnp.float32)
    per = (seq[:, 0] * 2 + seq[:, 1:].sum(1)) / 7.0
    seq_loss = jnp.sum(per * keep) / jnp.sum(keep)

    cls = bce(logits_cls.astype(jnp.float32), y_cls.astype(jnp.float32))
    cls_loss = jnp.mean((cls[:, 0] * 2 + cls[:, 1:].sum(1)) / 7.0)
    return {"seq_loss": seq_loss,
            "cls_loss": cls_loss,
            "loss": cls_weight * cls_loss + seq_weight * seq_loss}


if __name__ == "__main__":
    key = jax.random.PRNGKey(0)
    B, S, C = 2, 8, 6   # 6 ICH classes: "any" (weight 2) + 5 subtypes

    k1, k2, k3, k4, k5 = jax.random.split(key, 5)
    logits_seq = jax.random.normal(k1, (B, S, C), dtype=jnp.float32)
    logits_cls = jax.random.normal(k2, (B, C), dtype=jnp.float32)
    y_seq = (jax.random.uniform(k3, (B, S, C)) > 0.5).astype(jnp.float32)
    y_cls = (jax.random.uniform(k4, (B, C)) > 0.5).astype(jnp.float32)
    mask = jax.random.uniform(k5, (B, S)) > 0.7        # True = masked out
    mask = mask.at[0, 0].set(False)                    # at least one valid pos

    loss_fn = jax.jit(ich_seq_cls_masked_loss)
    out = loss_fn(logits_seq, logits_cls, y_seq, y_cls, mask)
    jax.block_until_ready(out["loss"])

    ref = _reference(logits_seq, logits_cls, y_seq, y_cls, mask)
    for name in ("seq_loss", "cls_loss", "loss"):
        assert jnp.allclose(out[name], ref[name], atol=1e-5, rtol=1e-5), (
            name, float(out[name]), float(ref[name]))

    print("KERNEL_OK")
</pallas_src>

<mosaic_0001>
module attributes {stable_mosaic.version = 11 : i64} {
  func.func @_seq_loss_kernel(%arg0: i32, %arg1: i32, %arg2: memref<2x48xf32, #tpu.memory_space<vmem>>, %arg3: memref<2x48xf32, #tpu.memory_space<vmem>>, %arg4: memref<2x48xi8, #tpu.memory_space<vmem>>, %arg5: memref<1x2x48xf32, #tpu.memory_space<vmem>>) attributes {dimension_semantics = [#tpu.dimension_semantics<parallel>, #tpu.dimension_semantics<arbitrary>], iteration_bounds = array<i64: 2, 1>, scalar_prefetch = 0 : i64, scratch_operands = 0 : i64, tpu.core_type = #tpu.core_type<tc>, window_params = [{transform_indices = @transform_0, window_bounds = array<i64: 2, 48>}, {transform_indices = @transform_1, window_bounds = array<i64: 2, 48>}, {transform_indices = @transform_2, window_bounds = array<i64: 2, 48>}, {transform_indices = @transform_3, window_bounds = array<i64: 1, 2, 48>}]} {
    %c0_i32 = arith.constant 0 : i32
    %0 = arith.cmpi eq, %arg1, %c0_i32 : i32
    %1 = arith.extui %0 : i1 to i32
    %c0_i32_0 = arith.constant 0 : i32
    %2 = arith.cmpi ne, %1, %c0_i32_0 : i32
    scf.if %2 {
      %cst_16 = arith.constant 0.000000e+00 : f32
      %34 = vector.broadcast %cst_16 : f32 to vector<1x2x48xf32>
      %c0_17 = arith.constant 0 : index
      %c0_18 = arith.constant 0 : index
      %c0_19 = arith.constant 0 : index
      %35 = vector.load %arg5[%c0_17, %c0_18, %c0_19] : memref<1x2x48xf32, #tpu.memory_space<vmem>>, vector<1x2x48xf32>
      tpu.vector_store %arg5[%c0_17, %c0_18, %c0_19], %34 {strides = array<i32>} : memref<1x2x48xf32, #tpu.memory_space<vmem>>, vector<1x2x48xf32>,
    } else {
    }
    %c0 = arith.constant 0 : index
    %c0_1 = arith.constant 0 : index
    %3 = vector.load %arg2[%c0, %c0_1] : memref<2x48xf32, #tpu.memory_space<vmem>>, vector<2x48xf32>
    %c0_2 = arith.constant 0 : index
    %c0_3 = arith.constant 0 : index
    %4 = vector.load %arg3[%c0_2, %c0_3] : memref<2x48xf32, #tpu.memory_space<vmem>>, vector<2x48xf32>
    %cst = arith.constant 0.000000e+00 : f32
    %5 = vector.broadcast %cst : f32 to vector<2x48xf32>
    %6 = arith.maximumf %3, %5 : vector<2x48xf32>
    %7 = arith.mulf %3, %4 : vector<2x48xf32>
    %8 = arith.subf %6, %7 : vector<2x48xf32>
    %9 = math.absf %3 : vector<2x48xf32>
    %cst_4 = arith.constant 0.000000e+00 : f32
    %10 = vector.broadcast %cst_4 : f32 to vector<2x48xf32>
    %11 = arith.subf %10, %9 : vector<2x48xf32>
    %12 = math.exp %11 : vector<2x48xf32>
    %cst_5 = arith.constant 1.000000e+00 : f32
    %13 = vector.broadcast %cst_5 : f32 to vector<2x48xf32>
    %14 = arith.addf %13, %12 : vector<2x48xf32>
    %15 = math.log %14 : vector<2x48xf32>
    %16 = arith.addf %8, %15 : vector<2x48xf32>
    %c1_i32 = arith.constant 1 : i32
    %17 = arith.muli %arg0, %c1_i32 : i32
    %18 = arith.addi %17, %arg1 : i32
    %c48_i32 = arith.constant 48 : i32
    %19 = arith.muli %18, %c48_i32 : i32
    %20 = tpu.iota {dimensions = array<i32: 1>} : vector<2x48xi32>
    %21 = vector.broadcast %19 : i32 to vector<2x48xi32>
    %22 = arith.addi %21, %20 : vector<2x48xi32>
    %c48_i32_6 = arith.constant 48 : i32
    %23 = vector.broadcast %c48_i32_6 : i32 to vector<2x48xi32>
    %24 = arith.cmpi slt, %22, %23 : vector<2x48xi32>
    %c0_7 = arith.constant 0 : index
    %c0_8 = arith.constant 0 : index
    %25 = vector.load %arg4[%c0_7, %c0_8] : memref<2x48xi8, #tpu.memory_space<vmem>>, vector<2x48xi8>
    %26 = arith.sitofp %25 : vector<2x48xi8> to vector<2x48xf32>
    %c0_9 = arith.constant 0 : index
    %c0_10 = arith.constant 0 : index
    %c0_11 = arith.constant 0 : index
    %27 = vector.load %arg5[%c0_9, %c0_10, %c0_11] : memref<1x2x48xf32, #tpu.memory_space<vmem>>, vector<1x2x48xf32>
    %cst_12 = arith.constant 0.000000e+00 : f32
    %28 = vector.broadcast %cst_12 : f32 to vector<2x48xf32>
    %29 = arith.select %24, %16, %28 : vector<2x48xi1>, vector<2x48xf32>
    %30 = arith.mulf %29, %26 : vector<2x48xf32>
    %31 = vector.shape_cast %30 : vector<2x48xf32> to vector<1x2x48xf32>
    %32 = arith.addf %27, %31 : vector<1x2x48xf32>
    %c0_13 = arith.constant 0 : index
    %c0_14 = arith.constant 0 : index
    %c0_15 = arith.constant 0 : index
    %33 = vector.load %arg5[%c0_13, %c0_14, %c0_15] : memref<1x2x48xf32, #tpu.memory_space<vmem>>, vector<1x2x48xf32>
    tpu.vector_store %arg5[%c0_13, %c0_14, %c0_15], %32 {strides = array<i32>} : memref<1x2x48xf32, #tpu.memory_space<vmem>>, vector<1x2x48xf32>,
    return
  }
  func.func @transform_0(%arg0: i32, %arg1: i32) -> (i32, i32) {
    %c1_i32 = arith.constant 1 : i32
    %0 = arith.muli %arg0, %c1_i32 : i32
    %1 = arith.addi %0, %arg1 : i32
    %c0_i32 = arith.constant 0 : i32
    %2 = arith.minsi %1, %c0_i32 : i32
    %c0_i32_0 = arith.constant 0 : i32
    %c0_i32_1 = arith.constant 0 : i32
    return %c0_i32_0, %2 : i32, i32
  }
  func.func @transform_1(%arg0: i32, %arg1: i32) -> (i32, i32) {
    %c1_i32 = arith.constant 1 : i32
    %0 = arith.muli %arg0, %c1_i32 : i32
    %1 = arith.addi %0, %arg1 : i32
    %c0_i32 = arith.constant 0 : i32
    %2 = arith.minsi %1, %c0_i32 : i32
    %c0_i32_0 = arith.constant 0 : i32
    %c0_i32_1 = arith.constant 0 : i32
    return %c0_i32_0, %2 : i32, i32
  }
  func.func @transform_2(%arg0: i32, %arg1: i32) -> (i32, i32) {
    %c1_i32 = arith.constant 1 : i32
    %0 = arith.muli %arg0, %c1_i32 : i32
    %1 = arith.addi %0, %arg1 : i32
    %c0_i32 = arith.constant 0 : i32
    %2 = arith.minsi %1, %c0_i32 : i32
    %c0_i32_0 = arith.constant 0 : i32
    %c0_i32_1 = arith.constant 0 : i32
    return %c0_i32_0, %2 : i32, i32
  }
  func.func @transform_3(%arg0: i32, %arg1: i32) -> (i32, i32, i32) {
    %c0_i32 = arith.constant 0 : i32
    %c0_i32_0 = arith.constant 0 : i32
    %c0_i32_1 = arith.constant 0 : i32
    return %arg0, %c0_i32, %c0_i32_0 : i32, i32, i32
  }
}

</mosaic_0001>

<bundles_post_ra>
// kernel: ich_seq_cls_masked_loss.1
= control target key start
LH: loop header
LB: loop body
LE: loop exit
PB: predicated region body
PF: predicated region fallthrough
CT: control target
= control target key end

     0   :  { %s482_s12 = smov 0   ;;  %s484_s13 = smov 0   ;;  %s535_s0 = inlined_call_operand.vmem [shape: f32[2,48], index: 0, kind: input, shape index: {}]   ;;  %s536_s1 = inlined_call_operand.vmem [shape: f32[2,48], index: 1, kind: input, shape index: {}]   ;;  %s537_s2 = inlined_call_operand.vmem [shape: s8[2,48], index: 2, kind: input, shape index: {}]   ;;  %s538_s3 = inlined_call_operand.vmem [shape: f32[2,2,48], index: 3, kind: output, shape index: {}]  }
   0x1   :  { %s486_s14 = smov 0  }
   0x2 LB: > { %s25_s15 = sadd.s32 1, %s455_s13  ;;  %p393_p0 = scmp.ge.s32.totalorder %s459_s14, 1  ;;  %s459_s14 = sphi %s486_s14, %s13_s14   ;;  %s455_s13 = sphi %s484_s13, %s540_s13   ;;  %s451_s12 = sphi %s482_s12, %s539_s12  }
   0x3   : > { %p27_p1 = scmp.ge.s32.totalorder %s25_s15, 2  ;;  %p201_p2 = scmp.lt.s32.totalorder %s459_s14, 3 }
   0x5   : > { %s542_s15 = smov (%p27_p1, %s25_s15), 0  ;;  %p202_p3 = pnand %p393_p0, %p201_p2 }
   0x6   : > { %p240_p4 = scmp.lt.s32.totalorder (!%p202_p3), %s451_s12, 0  ;;  %p268_p5 = scmp.lt.s32.totalorder (!%p202_p3), %s451_s12, 1  ;;  %vm276_vm0 = vcmask (!%p202_p3), 386048   ;;  %v461_v1 = vmov (!%p202_p3), 0.0   ;;  %v293_v7 = vlaneseq (!%p202_p3) }
   0x7   : > { %205 = sbr.rel (%p202_p3) target bundleno = 60 (0x3c), region = 32 }
   0x8   : > { %s292_s29 = smul.u32 (!%p202_p3), 48, %s451_s12  ;;  %v294_v9 = vand.u32 (!%p202_p3), 127, %v293_v7 }
   0xa   : > { %v295_v12 = vstv (!%p202_p3), %s292_s29 }
   0xb   : > { %v296_v14 = vadd.s32 (!%p202_p3), %v295_v12, %v294_v9 }
   0xd   : > { %vm297_vm1 = vcmp.lt.s32.totalorder (!%p202_p3), %v296_v14, 48 }
   0xe   : > { %s241_s16 = scalar_select %p240_p4, %s451_s12, 0 }
   0xf   : > { %s269_s17 = scalar_select %p268_p5, %s451_s12, 1 }
  0x10   : > { %s544_s16 = smov (!%p240_p4, %s241_s16), 0 }
  0x11   : > { %s405_s18 = sshll.u32 %s269_s17, 1  ;;  %s397_s19 = sshll.u32 %s544_s16, 1 }
  0x12   : > { %s245_s22 = scalar_lea.vmem %s535_s0, %s397_s19  ;;  %s512_s25 = scalar_lea.vmem %s538_s3, %s405_s18 }
  0x13   : > { %v278_v0 = vld [vmem:[%s245_s22] sm:$0x3]  ;;  %277 = vst.msk [vmem:[%s512_s25] sm:$0x3] %vm276_vm0, %v461_v1  ;;  %s255_s28 = scalar_lea.vmem %s536_s1, %s397_s19  ;;  %s264_s5 = scalar_lea.vmem %s537_s2, %s544_s16 }
  0x14   : > { %v283_v2 = vand.u32 2147483647, %v278_v0  ;;  %v279_v8 = vld [vmem:[%s255_s28] sm:$0x3]  ;;  %v280_v10 = vmax.f32 %v278_v0, 0.0 }
  0x15   : > { %v281_v11 = vmul.f32 %v279_v8, %v278_v0  ;;  %v298_v13 = vld [vmem:[%s264_s5] sm:$0x1] }
  0x16   : > { %v284_v3 = vsub.f32 0.0, %v283_v2  ;;  %v299_v15 = vunpack.c.0.s8 %v298_v13 }
  0x17   : > { %v282_v16 = vsub.f32 %v280_v10, %v281_v11 }
  0x18   : > { %v285_v4 = vmul.f32 1.442695, %v284_v3  ;;  %v300_v19 = vcvt.s32.f32 %v299_v15 }
  0x1a   : > { %433 = vpow2.f32 %v285_v4  ;;  %v301_v21 = vld [vmem:[%s512_s25] sm:$0x3] }
  0x24   : > { %v434_v5 = vpop.eup %433 }
  0x25   : > { %v287_v6 = vadd.f32 1.0, %v434_v5 }
  0x27   : > { %435 = vlog2.f32 %v287_v6 }
  0x31   : > { %v436_v17 = vpop.eup %435 }
  0x32   : > { %v289_v18 = vmul.f32 0.6931472, %v436_v17 }
  0x34   : > { %v290_v20 = vadd.f32 %v289_v18, %v282_v16 }
  0x36   : > { %v302_v22 = vsel %vm297_vm1, %v290_v20, 0.0 }
  0x37   : > { %v303_v23 = vmul.f32 %v302_v22, %v300_v19 }
  0x39   : > { %v304_v24 = vadd.f32 %v303_v23, %v301_v21 }
  0x3b   : > { %306 = vst.msk [vmem:[%s512_s25] sm:$0x3] %vm276_vm0, %v304_v24 }
  0x3c PF: > { %s13_s14 = sadd.s32 1, %s459_s14   ;;  %s539_s12 = smov %s455_s13 }
  0x3d   : > { %p10_p6 = scmp.ge.s32.totalorder %s13_s14, 4   ;;  %s540_s13 = smov %s542_s15 }
  0x3f   :  { %12 = sbr.rel (!%p10_p6) target bundleno = 2 (0x2), region = 72 }

</bundles_post_ra>
